<compile_context>
chip_gen: v7x
topology: tpu7x:2x2x1
jax: 0.10.0
libtpu: 0.0.40
codegen_flags: <defaults>
</compile_context>

<pallas_src>
import jax
import jax.numpy as jnp
from jax.experimental import pallas as pl
from jax.experimental.pallas import tpu as pltpu


def linear_add_kernel(x_ref, wb_ref, o_ref):
    # x_ref : (3,)   f32 in SMEM  -- activations as 3 cheap scalar loads
    # wb_ref: (4, 8) f32 in VMEM  -- rows 0..2 = W.T, row 3 = bias + other
    # o_ref : (1, 8) f32 in VMEM
    x0 = x_ref[0]
    x1 = x_ref[1]
    x2 = x_ref[2]
    # Tree-shaped accumulation: shorter dependent VALU chain than 3 serial FMAs.
    left = wb_ref[3:4, :] + x0 * wb_ref[0:1, :]
    right = x1 * wb_ref[1:2, :] + x2 * wb_ref[2:3, :]
    o_ref[...] = left + right


def prepare_params(weight, bias, other):
    """One-time parameter prep (outside the per-call hot path).

    weight: (8, 3) torch convention; bias: (8,); other: (1, 8).
    Returns wb: (4, 8) f32 with rows 0..2 = weight.T and row 3 = bias + other.
    """
    wt = jnp.asarray(weight, dtype=jnp.float32).T                       # (3, 8)
    bc = (jnp.asarray(bias, dtype=jnp.float32).reshape(1, -1)
          + jnp.asarray(other, dtype=jnp.float32))                      # (1, 8)
    return jnp.concatenate([wt, bc], axis=0)                            # (4, 8)


def model_forward(x, wb):
    """x: (1, 3) f32, wb: (4, 8) f32 -> (1, 8) f32."""
    assert x.shape == (1, 3), "this kernel path is specialized to batch=1 (module spec)"
    x_flat = x.reshape(3)  # 1-D SMEM input: 16 B padded instead of a 4 KiB 2-D pad
    return pl.pallas_call(
        linear_add_kernel,
        out_shape=jax.ShapeDtypeStruct((1, 8), jnp.float32),
        in_specs=[
            pl.BlockSpec(memory_space=pltpu.MemorySpace.SMEM),   # x: 3 scalars
            pl.BlockSpec(memory_space=pltpu.MemorySpace.VMEM),   # packed W.T + (bias+other)
        ],
        out_specs=pl.BlockSpec(memory_space=pltpu.MemorySpace.VMEM),
        cost_estimate=pl.CostEstimate(
            # 3 muls * 8 lanes + 3 adds * 8 lanes = 48 FLOPs.
            # Bytes reflect padded tile traffic: wb moves as an (8,128) f32 tile
            # (~4 KiB), output writeback up to one padded tile (~4 KiB), x SMEM
            # padded to 16 B.
            flops=48, transcendentals=0, bytes_accessed=8208
        ),
    )(x_flat, wb)


if __name__ == "__main__":
    key = jax.random.PRNGKey(0)
    kx, kw, kb = jax.random.split(key, 3)

    # Deterministic inputs / parameters matching the torch module shapes.
    x1 = jax.random.normal(kx, (1, 3), dtype=jnp.float32)             # torch.randn(1, 3)
    weight = jax.random.normal(kw, (8, 3), dtype=jnp.float32) * 0.1    # Linear(3, 8).weight
    bias = jax.random.normal(kb, (8,), dtype=jnp.float32) * 0.1        # Linear(3, 8).bias
    other = jnp.ones((1, 8), dtype=jnp.float32)                        # torch.ones(1, 8)

    # One-time param prep (transpose + bias/other fold + pack) out of the call path.
    wb = prepare_params(weight, bias, other)
    wb = jax.block_until_ready(wb)

    out = model_forward(x1, wb)
    jax.block_until_ready(out)

    # Reference check in plain JAX (torch.nn.Linear semantics).
    ref = x1 @ weight.T + bias.reshape(1, -1) + other
    assert out.shape == (1, 8)
    assert jnp.allclose(out, ref, atol=1e-5, rtol=1e-5), "mismatch vs reference"

    print("KERNEL_OK")
</pallas_src>

<mosaic_0001>
module attributes {stable_mosaic.version = 11 : i64} {
  func.func @linear_add_kernel(%arg0: memref<3xf32, #tpu.memory_space<smem>>, %arg1: memref<4x8xf32, #tpu.memory_space<vmem>>, %arg2: memref<1x8xf32, #tpu.memory_space<vmem>>) attributes {dimension_semantics = [], scalar_prefetch = 0 : i64, scratch_operands = 0 : i64, tpu.core_type = #tpu.core_type<tc>} {
    %c0 = arith.constant 0 : index
    %0 = memref.load %arg0[%c0] : memref<3xf32, #tpu.memory_space<smem>>
    %c1 = arith.constant 1 : index
    %1 = memref.load %arg0[%c1] : memref<3xf32, #tpu.memory_space<smem>>
    %c2 = arith.constant 2 : index
    %2 = memref.load %arg0[%c2] : memref<3xf32, #tpu.memory_space<smem>>
    %c3 = arith.constant 3 : index
    %c0_0 = arith.constant 0 : index
    %3 = vector.load %arg1[%c3, %c0_0] : memref<4x8xf32, #tpu.memory_space<vmem>>, vector<1x8xf32>
    %c0_1 = arith.constant 0 : index
    %c0_2 = arith.constant 0 : index
    %4 = vector.load %arg1[%c0_1, %c0_2] : memref<4x8xf32, #tpu.memory_space<vmem>>, vector<1x8xf32>
    %5 = vector.broadcast %0 : f32 to vector<1x8xf32>
    %6 = arith.mulf %5, %4 : vector<1x8xf32>
    %7 = arith.addf %3, %6 : vector<1x8xf32>
    %c1_3 = arith.constant 1 : index
    %c0_4 = arith.constant 0 : index
    %8 = vector.load %arg1[%c1_3, %c0_4] : memref<4x8xf32, #tpu.memory_space<vmem>>, vector<1x8xf32>
    %9 = vector.broadcast %1 : f32 to vector<1x8xf32>
    %10 = arith.mulf %9, %8 : vector<1x8xf32>
    %c2_5 = arith.constant 2 : index
    %c0_6 = arith.constant 0 : index
    %11 = vector.load %arg1[%c2_5, %c0_6] : memref<4x8xf32, #tpu.memory_space<vmem>>, vector<1x8xf32>
    %12 = vector.broadcast %2 : f32 to vector<1x8xf32>
    %13 = arith.mulf %12, %11 : vector<1x8xf32>
    %14 = arith.addf %10, %13 : vector<1x8xf32>
    %15 = arith.addf %7, %14 : vector<1x8xf32>
    %c0_7 = arith.constant 0 : index
    %c0_8 = arith.constant 0 : index
    %16 = vector.load %arg2[%c0_7, %c0_8] : memref<1x8xf32, #tpu.memory_space<vmem>>, vector<1x8xf32>
    tpu.vector_store %arg2[%c0_7, %c0_8], %15 {strides = array<i32>} : memref<1x8xf32, #tpu.memory_space<vmem>>, vector<1x8xf32>,
    return
  }
}

</mosaic_0001>

<bundles_post_ra>
// kernel: tpu_custom_call.1
= control target key start
LH: loop header
LB: loop body
LE: loop exit
PB: predicated region body
PF: predicated region fallthrough
CT: control target
= control target key end

     0   :  { %7 = vsyncpa [#allocation5], 0  ;;  %s188_s0 = inlined_call_operand.hbm [shape: f32[3], index: 0, kind: input, shape index: {}]   ;;  %s189_s1 = inlined_call_operand.hbm [shape: f32[4,8], index: 1, kind: input, shape index: {}]   ;;  %s190_s2 = inlined_call_operand.hbm [shape: f32[1,8], index: 2, kind: output, shape index: {}]  }
   0x1   :  { %8 = vsyncpa [#allocation3], 0 }
   0x2   :  { %9 = vsyncpa [#allocation4], 0  ;;  %s74_s11 = scalar_lea.hbm %s188_s0, 16 }
   0x3   :  { %p75_p0 = scmp.ne.s32.totalorder %s188_s0, %s74_s11  ;;  %p78_p1 = scmp.lt.u32.totalorder %s74_s11, %s188_s0 }
   0x5   :  { %p80_p2 = pnand %p78_p1, %p75_p0 }
   0x7   :  { %83 = shalt.err (!%p80_p2)
}
   0x8   :  { %s134_s16 = smov [#allocation2]   ;;  %s135_s19 = smov [#allocation6]  }
   0x9   :  { %17 = dma.hbm_to_smem %s188_s0, 16, %s134_s16, [#allocation5]  }
   0xa   :  { %s24_s20 = sshll.u32 %s135_s19, 4  ;;  %s84_s23 = scalar_lea.hbm %s189_s1, 64  ;;  %s25_s20 = int_to_ptr.vmem [resolvable:$true] %s24_s20 }
   0xb   :  { %p85_p3 = scmp.ne.s32.totalorder %s189_s1, %s84_s23  ;;  %p88_p4 = scmp.lt.u32.totalorder %s84_s23, %s189_s1 }
   0xd   :  { %p90_p5 = pnand %p88_p4, %p85_p3 }
   0xf   :  { %93 = shalt.err (!%p90_p5)
}
  0x10   :  { %s94_s28 = scalar_lea.vmem %s25_s20, 64  ;;  %p99_p7 = scmp.lt.s32.totalorder %s25_s20, %s25_s20 }
  0x11   :  { %p95_p6 = scmp.ne.s32.totalorder %s25_s20, %s94_s28  ;;  %p100_p8 = scmp.lt.s32.totalorder %s94_s28, %s94_s28 }
  0x13   :  { %p101_p9 = por %p100_p8, %p99_p7 }
  0x15   :  { %p102_p10 = pnand %p101_p9, %p95_p6 }
  0x17   :  { %105 = shalt.err (!%p102_p10)
}
  0x18   :  { %27 = dma.hbm_to_vmem [thread:$0]  %s189_s1, 64, %s25_s20, [#allocation3]  }
  0x19   :  { %128 = dma.done.wait [#allocation5], 16  }
  0x1a   :  { %129 = vsyncadd [#allocation5], 4294967280 }
  0x1b   :  { %130 = dma.done.wait [#allocation3], 64  }
  0x1c   :  { %131 = vsyncadd [#allocation3], 4294967232 }
  0x1d   :  { %34 = sfence }
  0x1e   :  { %s35_s30 = sld [smem:[#allocation2]]  ;;  %s69_s3 = sld [smem:[#allocation2 + $0x1]]  ;;  %v39_v0 = vld [vmem:[#allocation6] sm:$0x1]  ;;  %v43_v1 = vld [vmem:[#allocation6 + $0x1] sm:$0x1] }
  0x1f   :  { %s70_s4 = sld [smem:[#allocation2 + $0x2]]  ;;  %v46_v2 = vld [vmem:[#allocation6 + $0x2] sm:$0x1]  ;;  %v38_v3 = vld [vmem:[#allocation6 + $0x3] sm:$0x1]  ;;  %s136_s1 = smov [#allocation7]  }
  0x20   :  { %s59_s5 = sshll.u32 %s136_s1, 4  ;;  %vm51_vm0 = vcmask 57344   ;;  %s60_s5 = int_to_ptr.vmem [resolvable:$true] %s59_s5 }
  0x21   :  { %s106_s6 = scalar_lea.vmem %s60_s5, 16  ;;  %s110_s7 = scalar_lea.vmem %s60_s5, 32 }
  0x22   :  { %p107_p11 = scmp.ne.s32.totalorder %s60_s5, %s106_s6  ;;  %p111_p12 = scmp.lt.s32.totalorder %s60_s5, %s60_s5 }
  0x23   :  { %p112_p13 = scmp.lt.s32.totalorder %s110_s7, %s106_s6 }
  0x24   :  { %v40_v4 = vstv %s35_s30  ;;  %v44_v5 = vstv %s69_s3 }
  0x25   :  { %v41_v6 = vmul.f32 %v40_v4, %v39_v0  ;;  %v45_v7 = vmul.f32 %v44_v5, %v43_v1  ;;  %v47_v8 = vstv %s70_s4  ;;  %p113_p0 = por %p112_p13, %p111_p12 }
  0x26   :  { %v48_v9 = vmul.f32 %v47_v8, %v46_v2 }
  0x27   :  { %v42_v10 = vadd.f32 %v41_v6, %v38_v3  ;;  %p114_p1 = pnand %p113_p0, %p107_p11 }
  0x28   :  { %v49_v11 = vadd.f32 %v48_v9, %v45_v7 }
  0x2a   :  { %v50_v12 = vadd.f32 %v49_v11, %v42_v10 }
  0x2c   :  { %52 = vst.msk [vmem:[#allocation7] sm:$0x1] %vm51_vm0, %v50_v12 }
  0x2d   :  { %117 = shalt.err (!%p114_p1)
}
  0x2e   :  { %s118_s10 = scalar_lea.hbm %s190_s2, 16 }
  0x2f   :  { %p119_p2 = scmp.ne.s32.totalorder %s190_s2, %s118_s10  ;;  %p122_p3 = scmp.lt.u32.totalorder %s118_s10, %s190_s2 }
  0x31   :  { %p124_p4 = pnand %p122_p3, %p119_p2 }
  0x33   :  { %127 = shalt.err (!%p124_p4)
}
  0x34   :  { %62 = dma.vmem_to_hbm [thread:$0]  %s60_s5, 16, %s190_s2, [#allocation4]  }
  0x35   :  { %132 = dma.done.wait [#allocation4], 16  }
  0x36   :  { %133 = vsyncadd [#allocation4], 4294967280 }
  0x37   :  { %66 = vsyncpa [#allocation3], 1 }
  0x38   :  { %67 = vsyncpa [#allocation4], 1 }
  0x39   :  { %68 = vsyncpa [#allocation5], 1 }

</bundles_post_ra>
